<compile_context>
chip_gen: v7x
topology: tpu7x:2x2x1
jax: 0.10.0
libtpu: 0.0.40
codegen_flags: <defaults>
</compile_context>

<pallas_src>
import jax
import jax.numpy as jnp
from jax.experimental import pallas as pl
from jax.experimental.pallas import tpu as pltpu


def _dummy_linear_kernel(w_ref, b_ref, out_ref):
    # nn.Linear(1, C) applied to an all-ones column == (W[:, 0] + b) per row.
    # Pure VPU add + broadcast store; the kernel is HBM-store-bound.
    row = w_ref[...] + b_ref[...]                      # (1, C)
    out_ref[...] = jnp.broadcast_to(row, out_ref.shape)


def dummy_forward(x: jax.Array, weight_t: jax.Array, bias: jax.Array,
                  num_estimators: int) -> jax.Array:
    """Equivalent of _Dummy.forward.

    x:        any-shape array; only x.shape[0] (batch) is used.
    weight_t: (1, num_classes) float32 — transposed PyTorch Linear weight.
    bias:     (num_classes,)   float32.
    Returns (batch * num_estimators, num_classes) float32.
    """
    batch = x.shape[0]
    m = batch * num_estimators
    c = weight_t.shape[1]

    w2d = weight_t.reshape(1, c).astype(jnp.float32)
    b2d = bias.reshape(1, c).astype(jnp.float32)

    # Row-tile size: multiple of 8 (sublane packing), capped so a
    # double-buffered (TM, C) f32 output block is far under scoped VMEM on
    # every generation (v5e 16 MiB default, v7x 64 MiB physical).
    TM_MAX = 1024
    m_pad = max(8, ((m + 7) // 8) * 8)
    tm = min(TM_MAX, m_pad)
    m_pad = ((m_pad + tm - 1) // tm) * tm          # make TM divide padded M
    grid = (m_pad // tm,)

    out = pl.pallas_call(
        _dummy_linear_kernel,
        out_shape=jax.ShapeDtypeStruct((m_pad, c), jnp.float32),
        grid=grid,
        in_specs=[
            pl.BlockSpec((1, c), lambda i: (0, 0)),   # weight row (resident)
            pl.BlockSpec((1, c), lambda i: (0, 0)),   # bias row   (resident)
        ],
        out_specs=pl.BlockSpec((tm, c), lambda i: (i, 0)),
        compiler_params=pltpu.CompilerParams(
            dimension_semantics=("parallel",)),       # megacore / v7x 2-TC split
    )(w2d, b2d)

    return out[:m]


if __name__ == "__main__":
    # Module config (small, deterministic).
    in_channels = 3
    num_classes = 10
    num_estimators = 4
    batch = 2

    key = jax.random.PRNGKey(0)
    kx, kw, kb = jax.random.split(key, 3)

    # Example input consistent with an image-style model input (content unused).
    x = jax.random.normal(kx, (batch, in_channels, 16, 16), dtype=jnp.float32)

    # Deterministic Linear(1, num_classes) parameters.
    # PyTorch weight shape is (num_classes, 1); we store the transpose (1, num_classes).
    weight_t = jax.random.normal(kw, (1, num_classes), dtype=jnp.float32) * 0.1
    bias = jax.random.normal(kb, (num_classes,), dtype=jnp.float32) * 0.1

    out = dummy_forward(x, weight_t, bias, num_estimators)
    out = jax.block_until_ready(out)

    # Reference: ones @ W + b == broadcast(W[0] + b) per row (exact in f32).
    expected = jnp.broadcast_to(weight_t[0] + bias,
                                (batch * num_estimators, num_classes))
    assert out.shape == (batch * num_estimators, num_classes)
    assert jnp.allclose(out, expected, atol=1e-6)

    print("KERNEL_OK")
</pallas_src>

<mosaic_0001>
module attributes {stable_mosaic.version = 11 : i64} {
  func.func @_dummy_linear_kernel(%arg0: i32, %arg1: memref<1x10xf32, #tpu.memory_space<vmem>>, %arg2: memref<1x10xf32, #tpu.memory_space<vmem>>, %arg3: memref<8x10xf32, #tpu.memory_space<vmem>>) attributes {dimension_semantics = [#tpu.dimension_semantics<parallel>], iteration_bounds = array<i64: 1>, scalar_prefetch = 0 : i64, scratch_operands = 0 : i64, tpu.core_type = #tpu.core_type<tc>, window_params = [{pipeline_mode = #tpu.pipeline_mode<synchronous>, transform_indices = @transform_0, window_bounds = array<i64: 1, 10>}, {pipeline_mode = #tpu.pipeline_mode<synchronous>, transform_indices = @transform_1, window_bounds = array<i64: 1, 10>}, {transform_indices = @transform_2, window_bounds = array<i64: 8, 10>}]} {
    %c0 = arith.constant 0 : index
    %c0_0 = arith.constant 0 : index
    %0 = vector.load %arg1[%c0, %c0_0] : memref<1x10xf32, #tpu.memory_space<vmem>>, vector<1x10xf32>
    %c0_1 = arith.constant 0 : index
    %c0_2 = arith.constant 0 : index
    %1 = vector.load %arg2[%c0_1, %c0_2] : memref<1x10xf32, #tpu.memory_space<vmem>>, vector<1x10xf32>
    %2 = arith.addf %0, %1 : vector<1x10xf32>
    %3 = vector.shape_cast %2 : vector<1x10xf32> to vector<1x10xf32>
    %4 = vector.broadcast %3 : vector<1x10xf32> to vector<8x10xf32>
    %c0_3 = arith.constant 0 : index
    %c0_4 = arith.constant 0 : index
    %5 = vector.load %arg3[%c0_3, %c0_4] : memref<8x10xf32, #tpu.memory_space<vmem>>, vector<8x10xf32>
    tpu.vector_store %arg3[%c0_3, %c0_4], %4 {strides = array<i32>} : memref<8x10xf32, #tpu.memory_space<vmem>>, vector<8x10xf32>,
    return
  }
  func.func @transform_0(%arg0: i32) -> (i32, i32) {
    %c0_i32 = arith.constant 0 : i32
    %c0_i32_0 = arith.constant 0 : i32
    %c0_i32_1 = arith.constant 0 : i32
    return %c0_i32, %c0_i32_0 : i32, i32
  }
  func.func @transform_1(%arg0: i32) -> (i32, i32) {
    %c0_i32 = arith.constant 0 : i32
    %c0_i32_0 = arith.constant 0 : i32
    %c0_i32_1 = arith.constant 0 : i32
    return %c0_i32, %c0_i32_0 : i32, i32
  }
  func.func @transform_2(%arg0: i32) -> (i32, i32) {
    %c0_i32 = arith.constant 0 : i32
    %c0_i32_0 = arith.constant 0 : i32
    return %arg0, %c0_i32 : i32, i32
  }
}

</mosaic_0001>

<bundles_post_ra>
// kernel: tpu_custom_call.1
= control target key start
LH: loop header
LB: loop body
LE: loop exit
PB: predicated region body
PF: predicated region fallthrough
CT: control target
= control target key end

     0   :  { %7 = vsyncpa [#allocation3], 0  ;;  %s144_s0 = inlined_call_operand.hbm [shape: f32[1,10], index: 0, kind: input, shape index: {}]   ;;  %s145_s1 = inlined_call_operand.vmem [shape: f32[1,10], index: 1, kind: input, shape index: {}]   ;;  %s146_s2 = inlined_call_operand.hbm [shape: f32[8,10], index: 2, kind: output, shape index: {}]  }
   0x1   :  { %8 = vsyncpa [#allocation4], 0  ;;  %s100_s9 = smov [#allocation2]   ;;  %s52_s13 = scalar_lea.hbm %s144_s0, 16 }
   0x2   :  { %s15_s10 = sshll.u32 %s100_s9, 4  ;;  %p53_p0 = scmp.ne.s32.totalorder %s144_s0, %s52_s13  ;;  %s16_s10 = int_to_ptr.vmem [resolvable:$true] %s15_s10 }
   0x3   :  { %p56_p1 = scmp.lt.u32.totalorder %s52_s13, %s144_s0 }
   0x5   :  { %p58_p2 = pnand %p56_p1, %p53_p0 }
   0x7   :  { %61 = shalt.err (!%p58_p2)
}
   0x8   :  { %s62_s18 = scalar_lea.vmem %s16_s10, 16  ;;  %s66_s19 = scalar_lea.vmem %s16_s10, 32 }
   0x9   :  { %p63_p3 = scmp.ne.s32.totalorder %s16_s10, %s62_s18  ;;  %p67_p4 = scmp.lt.s32.totalorder %s16_s10, %s16_s10 }
   0xa   :  { %p68_p5 = scmp.lt.s32.totalorder %s66_s19, %s62_s18 }
   0xc   :  { %p69_p6 = por %p68_p5, %p67_p4 }
   0xe   :  { %p70_p7 = pnand %p69_p6, %p63_p3 }
  0x10   :  { %73 = shalt.err (!%p70_p7)
}
  0x11   :  { %18 = dma.hbm_to_vmem [thread:$0]  %s144_s0, 16, %s16_s10, [#allocation3]  }
  0x12   :  { %96 = dma.done.wait [#allocation3], 16  }
  0x13   :  { %97 = vsyncadd [#allocation3], 4294967280  ;;  %v28_v0 = vlaneseq  ;;  %v24_v3 = vld [vmem:[#allocation2] sm:$0x1]  ;;  %s101_s24 = smov [#allocation5]   ;;  %vm33_vm0 = vcmask 80896  }
  0x14   :  { %v25_v4 = vld [vmem:[%s145_s1] sm:$0x1]  ;;  %s41_s25 = sshll.u32 %s101_s24, 4  ;;  %s42_s25 = int_to_ptr.vmem [resolvable:$true] %s41_s25 }
  0x15   :  { %v29_v1 = vshrl.u32 %v28_v0, 7  ;;  %v26_v5 = vadd.f32 %v25_v4, %v24_v3  ;;  %s74_s26 = scalar_lea.vmem %s42_s25, 128  ;;  %p79_p9 = scmp.lt.s32.totalorder %s42_s25, %s42_s25 }
  0x16   :  { %p75_p8 = scmp.ne.s32.totalorder %s42_s25, %s74_s26  ;;  %p80_p10 = scmp.lt.s32.totalorder %s74_s26, %s74_s26 }
  0x17   :  { %v30_v2 = vsub.s32 0, %v29_v1 }
  0x18   :  { %p81_p11 = por %p80_p10, %p79_p9 }
  0x19   :  { %v31_v6 = vrot.slane %v26_v5, %v30_v2 }
  0x1a   :  { %p82_p12 = pnand %p81_p11, %p75_p8 }
  0x1b   :  { %34 = vst.msk [vmem:[#allocation5] sm:$0xff] %vm33_vm0, %v31_v6 }
  0x1c   :  { %85 = shalt.err (!%p82_p12)
}
  0x1d   :  { %s86_s28 = scalar_lea.hbm %s146_s2, 128 }
  0x1e   :  { %p87_p13 = scmp.ne.s32.totalorder %s146_s2, %s86_s28  ;;  %p90_p0 = scmp.lt.u32.totalorder %s86_s28, %s146_s2 }
  0x20   :  { %p92_p1 = pnand %p90_p0, %p87_p13 }
  0x22   :  { %95 = shalt.err (!%p92_p1)
}
  0x23   :  { %44 = dma.vmem_to_hbm [thread:$0]  %s42_s25, 128, %s146_s2, [#allocation4]  }
  0x24   :  { %98 = dma.done.wait [#allocation4], 128  }
  0x25   :  { %99 = vsyncadd [#allocation4], 4294967168 }
  0x26   :  { %48 = vsyncpa [#allocation3], 1 }
  0x27   :  { %49 = vsyncpa [#allocation4], 1 }

</bundles_post_ra>
